<compile_context>
chip_gen: v5e
topology: v5e:2x2
jax: 0.10.0
libtpu: 0.0.40
codegen_flags: <defaults>
</compile_context>

<pallas_src>
import functools
import math

import jax
import jax.numpy as jnp
from jax.experimental import pallas as pl
from jax.experimental.pallas import tpu as pltpu


_MAX_TILE_B = 4096  # per-grid-step batch tile (multiple of 128)


def _round_up(x, m):
    return ((x + m - 1) // m) * m


def _choose_tile(batch):
    """Pick (tile_b, steps): minimal padding; >=2 steps (v7x dual-TC) once B>=512."""
    min_steps = 2 if batch >= 512 else 1
    steps = max(min_steps, pl.cdiv(batch, _MAX_TILE_B))
    tile = min(_MAX_TILE_B, _round_up(pl.cdiv(batch, steps), 128))
    steps = pl.cdiv(batch, tile)
    return tile, steps


def _mlp_kernel(x_ref, w1_ref, b1_ref, w2_ref, b2_ref, w3_ref, b3_ref,
                w4_ref, b4_ref, o_ref, *, chunk):
    """One batch tile.

    x_ref : (tile_b, 2)  row-major input block (batch on sublanes).
    o_ref : (2, tile_b)  feature-major output block (batch lane-dense).
    w*_ref: (out, in) transposed weights; b*_ref: (out, 1) bias columns.
    """
    n_chunks = x_ref.shape[0] // chunk

    def body(c, carry):
        off = pl.multiple_of(c * chunk, chunk)
        x = x_ref[pl.ds(off, chunk), :]                        # (C, 2)

        # Layer 1 (2 -> 32) on the MXU.  Contract the last dim of both operands
        # ("q @ k.T" pattern) so the result is feature-major (32, C) with the
        # batch dim dense on lanes -- no explicit transpose of the input.
        h = jax.lax.dot_general(
            w1_ref[...], x, (((1,), (1,)), ((), ())),
            preferred_element_type=jnp.float32)                # (32, C)
        h = jnp.maximum(h + b1_ref[...], 0.0)

        # Layer 2 (32 -> 64), feature-major MXU matmul.
        h = jnp.dot(w2_ref[...], h, preferred_element_type=jnp.float32)
        h = jnp.maximum(h + b2_ref[...], 0.0)                  # (64, C)

        # Layer 3 (64 -> 32).
        h = jnp.dot(w3_ref[...], h, preferred_element_type=jnp.float32)
        h = jnp.maximum(h + b3_ref[...], 0.0)                  # (32, C)

        # Layer 4 (32 -> 2): tiny M=2 matmul; (2, C) result, lane-dense store.
        out = jnp.dot(w4_ref[...], h, preferred_element_type=jnp.float32)
        out = out + b4_ref[...]                                # (2, C)

        o_ref[:, pl.ds(off, chunk)] = out.astype(o_ref.dtype)
        return carry

    jax.lax.fori_loop(0, n_chunks, body, 0, unroll=min(2, n_chunks))


def gmodel_forward(data, params, *, tile_b=None):
    """data: (B, 2) f32; params: 4 x (W:(in,out), b:(1,out)); returns (B, 2) f32."""
    batch = data.shape[0]
    assert data.shape[1] == 2

    if tile_b is None:
        tile_b, steps = _choose_tile(batch)
    else:
        assert tile_b % 128 == 0
        steps = pl.cdiv(batch, tile_b)
    b_pad = steps * tile_b
    # In-kernel chunk width: keeps the largest f32 intermediate (64 x chunk)
    # at <= 16 vregs, i.e. register-resident.
    chunk = 256 if tile_b % 256 == 0 else 128

    # Pad only when the batch is ragged w.r.t. the tile (zeros flow through the
    # net and the padded rows are sliced off below).
    x = data if b_pad == batch else jnp.pad(data, ((0, b_pad - batch), (0, 0)))

    (w1, b1), (w2, b2), (w3, b3), (w4, b4) = params
    w1t, w2t, w3t, w4t = w1.T, w2.T, w3.T, w4.T                # (out, in)
    b1c, b2c, b3c, b4c = (jnp.reshape(b, (-1, 1)) for b in (b1, b2, b3, b4))

    def resident(a):  # whole small array, kept in VMEM across all grid steps
        return pl.BlockSpec(a.shape, lambda i: (0, 0))

    out_fm = pl.pallas_call(
        functools.partial(_mlp_kernel, chunk=chunk),
        out_shape=jax.ShapeDtypeStruct((2, b_pad), jnp.float32),
        grid=(steps,),
        in_specs=[
            pl.BlockSpec((tile_b, 2), lambda i: (i, 0)),       # row-major data
            resident(w1t), resident(b1c),
            resident(w2t), resident(b2c),
            resident(w3t), resident(b3c),
            resident(w4t), resident(b4c),
        ],
        out_specs=pl.BlockSpec((2, tile_b), lambda i: (0, i)),  # lane-dense out
        compiler_params=pltpu.CompilerParams(
            dimension_semantics=("parallel",)),
    )(x, w1t, b1c, w2t, b2c, w3t, b3c, w4t, b4c)

    # Single thin layout fix back to the caller's (B, 2) row-major convention.
    out = jnp.transpose(out_fm)
    return out if b_pad == batch else out[:batch]


def init_params(key):
    """Deterministic init matching nn.Linear defaults (uniform +-1/sqrt(fan_in))."""
    sizes = [(2, 32), (32, 64), (64, 32), (32, 2)]
    params = []
    for fan_in, fan_out in sizes:
        key, kw, kb = jax.random.split(key, 3)
        bound = 1.0 / math.sqrt(fan_in)
        w = jax.random.uniform(kw, (fan_in, fan_out), jnp.float32, -bound, bound)
        b = jax.random.uniform(kb, (1, fan_out), jnp.float32, -bound, bound)
        params.append((w, b))
    return params


def reference_forward(data, params):
    h = data
    for i, (w, b) in enumerate(params):
        h = h @ w + b
        if i < len(params) - 1:
            h = jnp.maximum(h, 0.0)
    return h


if __name__ == "__main__":
    key = jax.random.PRNGKey(0)
    key, kdata = jax.random.split(key)
    params = init_params(key)

    # Small single-tile case (B padded up to one 128-lane chunk).
    B = 8
    data = jax.random.normal(kdata, (B, 2), jnp.float32)
    out = jax.block_until_ready(gmodel_forward(data, params))
    ref = reference_forward(data, params)
    assert out.shape == (B, 2)
    assert jnp.allclose(out, ref, atol=1e-5, rtol=1e-5)

    # Ragged multi-step case: tile_b=384 -> 2 grid steps, chunk=128, 3 chunks/tile.
    key, k2 = jax.random.split(key)
    B2 = 600
    data2 = jax.random.normal(k2, (B2, 2), jnp.float32)
    out2 = jax.block_until_ready(gmodel_forward(data2, params))
    assert out2.shape == (B2, 2)
    assert jnp.allclose(out2, reference_forward(data2, params), atol=1e-5, rtol=1e-5)

    # Aligned multi-step case exercising the chunk=256 path (explicit tile).
    key, k3 = jax.random.split(key)
    B3 = 1024
    data3 = jax.random.normal(k3, (B3, 2), jnp.float32)
    out3 = jax.block_until_ready(gmodel_forward(data3, params, tile_b=512))
    assert out3.shape == (B3, 2)
    assert jnp.allclose(out3, reference_forward(data3, params), atol=1e-5, rtol=1e-5)

    print("KERNEL_OK")
</pallas_src>

<mosaic_0001>
module attributes {stable_mosaic.version = 11 : i64} {
  func.func @_mlp_kernel(%arg0: i32, %arg1: memref<128x2xf32, #tpu.memory_space<vmem>>, %arg2: memref<32x2xf32, #tpu.memory_space<vmem>>, %arg3: memref<32x1xf32, #tpu.memory_space<vmem>>, %arg4: memref<64x32xf32, #tpu.memory_space<vmem>>, %arg5: memref<64x1xf32, #tpu.memory_space<vmem>>, %arg6: memref<32x64xf32, #tpu.memory_space<vmem>>, %arg7: memref<32x1xf32, #tpu.memory_space<vmem>>, %arg8: memref<2x32xf32, #tpu.memory_space<vmem>>, %arg9: memref<2x1xf32, #tpu.memory_space<vmem>>, %arg10: memref<2x128xf32, #tpu.memory_space<vmem>>) attributes {dimension_semantics = [#tpu.dimension_semantics<parallel>], iteration_bounds = array<i64: 1>, scalar_prefetch = 0 : i64, scratch_operands = 0 : i64, tpu.core_type = #tpu.core_type<tc>, window_params = [{transform_indices = @transform_0, window_bounds = array<i64: 128, 2>}, {pipeline_mode = #tpu.pipeline_mode<synchronous>, transform_indices = @transform_1, window_bounds = array<i64: 32, 2>}, {pipeline_mode = #tpu.pipeline_mode<synchronous>, transform_indices = @transform_2, window_bounds = array<i64: 32, 1>}, {pipeline_mode = #tpu.pipeline_mode<synchronous>, transform_indices = @transform_3, window_bounds = array<i64: 64, 32>}, {pipeline_mode = #tpu.pipeline_mode<synchronous>, transform_indices = @transform_4, window_bounds = array<i64: 64, 1>}, {pipeline_mode = #tpu.pipeline_mode<synchronous>, transform_indices = @transform_5, window_bounds = array<i64: 32, 64>}, {pipeline_mode = #tpu.pipeline_mode<synchronous>, transform_indices = @transform_6, window_bounds = array<i64: 32, 1>}, {pipeline_mode = #tpu.pipeline_mode<synchronous>, transform_indices = @transform_7, window_bounds = array<i64: 2, 32>}, {pipeline_mode = #tpu.pipeline_mode<synchronous>, transform_indices = @transform_8, window_bounds = array<i64: 2, 1>}, {transform_indices = @transform_9, window_bounds = array<i64: 2, 128>}]} {
    %c0_i32 = arith.constant 0 : i32
    %c128_i32 = arith.constant 128 : i32
    %0 = arith.muli %c0_i32, %c128_i32 : i32
    %1 = tpu.assume_multiple %0, 128 : i32
    %2 = arith.index_cast %1 : i32 to index
    %c0 = arith.constant 0 : index
    %3 = vector.load %arg1[%2, %c0] : memref<128x2xf32, #tpu.memory_space<vmem>>, vector<128x2xf32>
    %c0_0 = arith.constant 0 : index
    %c0_1 = arith.constant 0 : index
    %4 = vector.load %arg2[%c0_0, %c0_1] : memref<32x2xf32, #tpu.memory_space<vmem>>, vector<32x2xf32>
    %cst = arith.constant dense<0.000000e+00> : vector<32x128xf32>
    %5 = tpu.matmul %4, %3, %cst {dimension_numbers = #tpu.dot_dimension_numbers<[1], [1], [0], [0], [0, 0, 1, 0], [], []>} : vector<32x2xf32>, vector<128x2xf32>, vector<32x128xf32> -> vector<32x128xf32>
    %c0_2 = arith.constant 0 : index
    %c0_3 = arith.constant 0 : index
    %6 = vector.load %arg3[%c0_2, %c0_3] : memref<32x1xf32, #tpu.memory_space<vmem>>, vector<32x1xf32>
    %7 = vector.broadcast %6 : vector<32x1xf32> to vector<32x128xf32>
    %8 = arith.addf %5, %7 : vector<32x128xf32>
    %cst_4 = arith.constant 0.000000e+00 : f32
    %9 = vector.broadcast %cst_4 : f32 to vector<32x128xf32>
    %10 = arith.maximumf %8, %9 : vector<32x128xf32>
    %c0_5 = arith.constant 0 : index
    %c0_6 = arith.constant 0 : index
    %11 = vector.load %arg4[%c0_5, %c0_6] : memref<64x32xf32, #tpu.memory_space<vmem>>, vector<64x32xf32>
    %cst_7 = arith.constant dense<0.000000e+00> : vector<64x128xf32>
    %12 = tpu.matmul %11, %10, %cst_7 {dimension_numbers = #tpu.dot_dimension_numbers<[1], [0], [0], [1], [0, 0, 1, 1], [], []>} : vector<64x32xf32>, vector<32x128xf32>, vector<64x128xf32> -> vector<64x128xf32>
    %c0_8 = arith.constant 0 : index
    %c0_9 = arith.constant 0 : index
    %13 = vector.load %arg5[%c0_8, %c0_9] : memref<64x1xf32, #tpu.memory_space<vmem>>, vector<64x1xf32>
    %14 = vector.broadcast %13 : vector<64x1xf32> to vector<64x128xf32>
    %15 = arith.addf %12, %14 : vector<64x128xf32>
    %cst_10 = arith.constant 0.000000e+00 : f32
    %16 = vector.broadcast %cst_10 : f32 to vector<64x128xf32>
    %17 = arith.maximumf %15, %16 : vector<64x128xf32>
    %c0_11 = arith.constant 0 : index
    %c0_12 = arith.constant 0 : index
    %18 = vector.load %arg6[%c0_11, %c0_12] : memref<32x64xf32, #tpu.memory_space<vmem>>, vector<32x64xf32>
    %cst_13 = arith.constant dense<0.000000e+00> : vector<32x128xf32>
    %19 = tpu.matmul %18, %17, %cst_13 {dimension_numbers = #tpu.dot_dimension_numbers<[1], [0], [0], [1], [0, 0, 1, 1], [], []>} : vector<32x64xf32>, vector<64x128xf32>, vector<32x128xf32> -> vector<32x128xf32>
    %c0_14 = arith.constant 0 : index
    %c0_15 = arith.constant 0 : index
    %20 = vector.load %arg7[%c0_14, %c0_15] : memref<32x1xf32, #tpu.memory_space<vmem>>, vector<32x1xf32>
    %21 = vector.broadcast %20 : vector<32x1xf32> to vector<32x128xf32>
    %22 = arith.addf %19, %21 : vector<32x128xf32>
    %cst_16 = arith.constant 0.000000e+00 : f32
    %23 = vector.broadcast %cst_16 : f32 to vector<32x128xf32>
    %24 = arith.maximumf %22, %23 : vector<32x128xf32>
    %c0_17 = arith.constant 0 : index
    %c0_18 = arith.constant 0 : index
    %25 = vector.load %arg8[%c0_17, %c0_18] : memref<2x32xf32, #tpu.memory_space<vmem>>, vector<2x32xf32>
    %cst_19 = arith.constant dense<0.000000e+00> : vector<2x128xf32>
    %26 = tpu.matmul %25, %24, %cst_19 {dimension_numbers = #tpu.dot_dimension_numbers<[1], [0], [0], [1], [0, 0, 1, 1], [], []>} : vector<2x32xf32>, vector<32x128xf32>, vector<2x128xf32> -> vector<2x128xf32>
    %c0_20 = arith.constant 0 : index
    %c0_21 = arith.constant 0 : index
    %27 = vector.load %arg9[%c0_20, %c0_21] : memref<2x1xf32, #tpu.memory_space<vmem>>, vector<2x1xf32>
    %28 = vector.broadcast %27 : vector<2x1xf32> to vector<2x128xf32>
    %29 = arith.addf %26, %28 : vector<2x128xf32>
    %c0_22 = arith.constant 0 : index
    %30 = arith.index_cast %1 : i32 to index
    %31 = vector.load %arg10[%c0_22, %30] : memref<2x128xf32, #tpu.memory_space<vmem>>, vector<2x128xf32>
    tpu.vector_store %arg10[%c0_22, %30], %29 {strides = array<i32>} : memref<2x128xf32, #tpu.memory_space<vmem>>, vector<2x128xf32>,
    %c1_i32 = arith.constant 1 : i32
    return
  }
  func.func @transform_0(%arg0: i32) -> (i32, i32) {
    %c0_i32 = arith.constant 0 : i32
    %c0_i32_0 = arith.constant 0 : i32
    return %arg0, %c0_i32 : i32, i32
  }
  func.func @transform_1(%arg0: i32) -> (i32, i32) {
    %c0_i32 = arith.constant 0 : i32
    %c0_i32_0 = arith.constant 0 : i32
    %c0_i32_1 = arith.constant 0 : i32
    return %c0_i32, %c0_i32_0 : i32, i32
  }
  func.func @transform_2(%arg0: i32) -> (i32, i32) {
    %c0_i32 = arith.constant 0 : i32
    %c0_i32_0 = arith.constant 0 : i32
    %c0_i32_1 = arith.constant 0 : i32
    return %c0_i32, %c0_i32_0 : i32, i32
  }
  func.func @transform_3(%arg0: i32) -> (i32, i32) {
    %c0_i32 = arith.constant 0 : i32
    %c0_i32_0 = arith.constant 0 : i32
    %c0_i32_1 = arith.constant 0 : i32
    return %c0_i32, %c0_i32_0 : i32, i32
  }
  func.func @transform_4(%arg0: i32) -> (i32, i32) {
    %c0_i32 = arith.constant 0 : i32
    %c0_i32_0 = arith.constant 0 : i32
    %c0_i32_1 = arith.constant 0 : i32
    return %c0_i32, %c0_i32_0 : i32, i32
  }
  func.func @transform_5(%arg0: i32) -> (i32, i32) {
    %c0_i32 = arith.constant 0 : i32
    %c0_i32_0 = arith.constant 0 : i32
    %c0_i32_1 = arith.constant 0 : i32
    return %c0_i32, %c0_i32_0 : i32, i32
  }
  func.func @transform_6(%arg0: i32) -> (i32, i32) {
    %c0_i32 = arith.constant 0 : i32
    %c0_i32_0 = arith.constant 0 : i32
    %c0_i32_1 = arith.constant 0 : i32
    return %c0_i32, %c0_i32_0 : i32, i32
  }
  func.func @transform_7(%arg0: i32) -> (i32, i32) {
    %c0_i32 = arith.constant 0 : i32
    %c0_i32_0 = arith.constant 0 : i32
    %c0_i32_1 = arith.constant 0 : i32
    return %c0_i32, %c0_i32_0 : i32, i32
  }
  func.func @transform_8(%arg0: i32) -> (i32, i32) {
    %c0_i32 = arith.constant 0 : i32
    %c0_i32_0 = arith.constant 0 : i32
    %c0_i32_1 = arith.constant 0 : i32
    return %c0_i32, %c0_i32_0 : i32, i32
  }
  func.func @transform_9(%arg0: i32) -> (i32, i32) {
    %c0_i32 = arith.constant 0 : i32
    %c0_i32_0 = arith.constant 0 : i32
    return %c0_i32, %arg0 : i32, i32
  }
}

</mosaic_0001>

<bundles_post_ra>
// kernel: tpu_custom_call.1
= control target key start
LH: loop header
LB: loop body
LE: loop exit
PB: predicated region body
PF: predicated region fallthrough
CT: control target
= control target key end

     0   :  { %vm77_vm0 = vcmask 15360   ;;  %s720_s0 = inlined_call_operand.vmem [shape: f32[128,2], index: 0, kind: input, shape index: {}]   ;;  %s721_s1 = inlined_call_operand.vmem [shape: f32[32,2], index: 1, kind: input, shape index: {}]   ;;  %s722_s2 = inlined_call_operand.vmem [shape: f32[32,1], index: 2, kind: input, shape index: {}]   ;;  %s723_s3 = inlined_call_operand.vmem [shape: f32[64,32], index: 3, kind: input, shape index: {}]   ;;  %s724_s4 = inlined_call_operand.vmem [shape: f32[64,1], index: 4, kind: input, shape index: {}]   ;;  %s725_s5 = inlined_call_operand.vmem [shape: f32[32,64], index: 5, kind: input, shape index: {}]   ;;  %s726_s6 = inlined_call_operand.vmem [shape: f32[32,1], index: 6, kind: input, shape index: {}]   ;;  %s727_s7 = inlined_call_operand.vmem [shape: f32[2,32], index: 7, kind: input, shape index: {}]   ;;  %s728_s8 = inlined_call_operand.vmem [shape: f32[2,1], index: 8, kind: input, shape index: {}]   ;;  %s729_s9 = inlined_call_operand.hbm [shape: f32[2,128], index: 9, kind: output, shape index: {}]  }
   0x1   :  { %v48_v0 = vld [vmem:[%s720_s0 + $0x78] sm:$0xff]  ;;  %v47_v1 = vld [vmem:[%s720_s0 + $0x70] sm:$0xff] }
   0x2   :  { %422 = vmatpush.xpose.msk.msra.mxu0 %vm77_vm0, %v48_v0 }
   0x3   :  { %14 = vsyncpa [#allocation3], 0  ;;  %v46_v2 = vld [vmem:[%s720_s0 + $0x68] sm:$0xff]  ;;  %v45_v3 = vld [vmem:[%s720_s0 + $0x60] sm:$0xff]  ;;  %v486_v7 = vmov 0   ;;  %vm227_vm1 = vcmask 261120  }
   0x4   :  { %v44_v4 = vld [vmem:[%s720_s0 + $0x58] sm:$0xff]  ;;  %v43_v6 = vld [vmem:[%s720_s0 + $0x50] sm:$0xff]  ;;  %457 = vset.pattern.permute.xlu0 %v486_v7  ;;  %458 = vset.pattern.permute.xlu1 %v486_v7  ;;  %v54_v8 = vld [vmem:[%s722_s2 + $0x8] sm:$0xff]  ;;  %vm329_vm2 = vcmask 523264   ;;  %s487_s12 = smov [#allocation2]   ;;  %s413_s16 = sshll.u32 %s729_s9, 4  ;;  %s414_s16 = int_to_ptr.hbm [resolvable:$true] %s413_s16 }
   0x5   :  { %v56_v5 = vld [vmem:[%s722_s2 + $0x18] sm:$0xff]  ;;  %459 = vset.pattern.permute.xlu2 %v486_v7  ;;  %v42_v9 = vld [vmem:[%s720_s0 + $0x48] sm:$0xff]  ;;  %64 = vperm.xlu1 %458, %v54_v8   ;;  %v55_v10 = vld [vmem:[%s722_s2 + $0x10] sm:$0xff]  ;;  %s411_s13 = sshll.u32 %s487_s12, 4  ;;  %s412_s13 = int_to_ptr.vmem [resolvable:$true] %s411_s13 }
   0x6   :  { %423 = vmatpush.xpose.msk.msra.mxu0 %vm77_vm0, %v47_v1  ;;  %74 = vperm.xlu0 %457, %v56_v5   ;;  %v41_v11 = vld [vmem:[%s720_s0 + $0x40] sm:$0xff]  ;;  %v40_v12 = vld [vmem:[%s720_s0 + $0x38] sm:$0xff]  ;;  %v184_v14 = vld [vmem:[%s724_s4 + $0x28] sm:$0xff] }
   0x7   :  { %v53_v13 = vld [vmem:[%s722_s2] sm:$0xff]  ;;  %v39_v15 = vld [vmem:[%s720_s0 + $0x30] sm:$0xff]  ;;  %v38_v16 = vld [vmem:[%s720_s0 + $0x28] sm:$0xff] }
   0x8   :  { %v183_v17 = vld [vmem:[%s724_s4 + $0x20] sm:$0xff]  ;;  %v181_v18 = vld [vmem:[%s724_s4 + $0x10] sm:$0xff]  ;;  %v36_v20 = vld [vmem:[%s720_s0 + $0x18] sm:$0xff] }
   0x9   :  { %v37_v19 = vld [vmem:[%s720_s0 + $0x20] sm:$0xff]  ;;  %v180_v21 = vld [vmem:[%s724_s4 + $0x8] sm:$0xff]  ;;  %v308_v22 = vld [vmem:[%s726_s6 + $0x18] sm:$0xff] }
   0xa   :  { %424 = vmatpush.xpose.msk.msra.mxu0 %vm77_vm0, %v46_v2  ;;  %v35_v23 = vld [vmem:[%s720_s0 + $0x10] sm:$0xff]  ;;  %v34_v24 = vld [vmem:[%s720_s0 + $0x8] sm:$0xff]  ;;  %v305_v26 = vld [vmem:[%s726_s6] sm:$0xff] }
   0xb   :  { %v307_v25 = vld [vmem:[%s726_s6 + $0x10] sm:$0xff]  ;;  %v33_v27 = vld [vmem:[%s720_s0] sm:$0xff]  ;;  %v50_v30 = vld [vmem:[%s721_s1 + $0x8] sm:$0xff] }
   0xc   :  { %v49_v28 = vld [vmem:[%s721_s1] sm:$0xff]  ;;  %v51_v31 = vld [vmem:[%s721_s1 + $0x10] sm:$0xff]  ;;  %v52_v32 = vld [vmem:[%s721_s1 + $0x18] sm:$0xff] }
   0xd   :  { %59 = vperm.xlu1 %458, %v53_v13   ;;  %v376_v29 = vld [vmem:[%s728_s8] sm:$0x3]  ;;  %v186_v35 = vld [vmem:[%s724_s4 + $0x38] sm:$0xff]  ;;  %v185_v39 = vld [vmem:[%s724_s4 + $0x30] sm:$0xff] }
   0xe   :  { %425 = vmatpush.xpose.msk.msra.mxu0 %vm77_vm0, %v45_v3  ;;  %69 = vperm.xlu0 %457, %v55_v10   ;;  %v182_v47 = vld [vmem:[%s724_s4 + $0x18] sm:$0xff]  ;;  %v171_v52 = vld [vmem:[%s723_s3] sm:$0xff]  ;;  %v172_v54 = vld [vmem:[%s723_s3 + $0x8] sm:$0xff] }
   0xf   :  { %224 = vperm.xlu2 %459, %v186_v35   ;;  %v179_v53 = vld [vmem:[%s724_s4] sm:$0xff]  ;;  %v173_v55 = vld [vmem:[%s723_s3 + $0x10] sm:$0xff]  ;;  %v174_v56 = vld [vmem:[%s723_s3 + $0x18] sm:$0xff] }
  0x10   :  { %v306_v57 = vld [vmem:[%s726_s6 + $0x8] sm:$0xff]  ;;  %v175_v58 = vld [vmem:[%s723_s3 + $0x20] sm:$0xff]  ;;  %v177_v60 = vld [vmem:[%s723_s3 + $0x30] sm:$0xff] }
  0x11   :  { %v176_v59 = vld [vmem:[%s723_s3 + $0x28] sm:$0xff]  ;;  %v178_v61 = vld [vmem:[%s723_s3 + $0x38] sm:$0xff] }
  0x12   :  { %426 = vmatpush.xpose.msk.msra.mxu0 %vm77_vm0, %v44_v4 }
  0x15   :  { %209 = vperm.xlu1 %458, %v183_v17  }
  0x16   :  { %427 = vmatpush.xpose.msk.msra.mxu0 %vm77_vm0, %v43_v6  ;;  %214 = vperm.xlu0 %457, %v184_v14  }
  0x17   :  { %219 = vperm.xlu2 %459, %v185_v39  }
  0x1a   :  { %428 = vmatpush.xpose.msk.msra.mxu0 %vm77_vm0, %v42_v9 }
  0x1d   :  { %194 = vperm.xlu1 %458, %v180_v21  }
  0x1e   :  { %429 = vmatpush.xpose.msk.msra.mxu0 %vm77_vm0, %v41_v11  ;;  %199 = vperm.xlu0 %457, %v181_v18  }
  0x1f   :  { %204 = vperm.xlu2 %459, %v182_v47  }
  0x22   :  { %430 = vmatpush.xpose.msk.msra.mxu0 %vm77_vm0, %v40_v12 }
  0x25   :  { %321 = vperm.xlu1 %458, %v307_v25  }
  0x26   :  { %431 = vmatpush.xpose.msk.msra.mxu0 %vm77_vm0, %v39_v15  ;;  %326 = vperm.xlu0 %457, %v308_v22  }
  0x27   :  { %189 = vperm.xlu2 %459, %v179_v53  }
  0x2a   :  { %432 = vmatpush.xpose.msk.msra.mxu0 %vm77_vm0, %v38_v16 }
  0x2d   :  { %379 = vperm.xlu1 %458, %v376_v29  }
  0x2e   :  { %433 = vmatpush.xpose.msk.msra.mxu0 %vm77_vm0, %v37_v19  ;;  %311 = vperm.xlu0 %457, %v305_v26  }
  0x2f   :  { %316 = vperm.xlu2 %459, %v306_v57  }
  0x32   :  { %434 = vmatpush.xpose.msk.msra.mxu0 %vm77_vm0, %v36_v20 }
  0x36   :  { %435 = vmatpush.xpose.msk.msra.mxu0 %vm77_vm0, %v35_v23 }
  0x3a   :  { %436 = vmatpush.xpose.msk.msra.mxu0 %vm77_vm0, %v34_v24 }
  0x3e   :  { %437 = vmatpush.xpose.msk.msra.mxu0 %vm77_vm0, %v33_v27 }
  0x41   :  { %438 = vmatmul.msk.f32.vlgmr.msra.gmra.mxu0 %vm77_vm0, %v49_v28 }
  0x49   :  { %439 = vmatmul.msk.f32.gmra.mxu0 %vm77_vm0, %v50_v30  ;;  %v301_v30 = vld [vmem:[%s725_s5] sm:$0xff] }
  0x51   :  { %440 = vmatmul.msk.f32.gmra.mxu0 %vm77_vm0, %v51_v31  ;;  %v302_v31 = vld [vmem:[%s725_s5 + $0x8] sm:$0xff] }
  0x59   :  { %441 = vmatmul.msk.f32.gmra.mxu0 %vm77_vm0, %v52_v32  ;;  %v303_v32 = vld [vmem:[%s725_s5 + $0x10] sm:$0xff] }
  0x69   :  { %v225_v3 = vpop.permute.xlu2 %224 }
  0x71   :  { %v220_v5 = vpop.permute.xlu2 %219 }
  0x77   :  { %v65_v38 = vpop.permute.xlu1 %64 }
  0x78   :  { %v75_v36 = vpop.permute.xlu0 %74 }
  0x79   :  { %v205_v9 = vpop.permute.xlu2 %204 }
  0x7f   :  { %v60_v46 = vpop.permute.xlu1 %59 }
  0x80   :  { %v70_v40 = vpop.permute.xlu0 %69 }
  0x81   :  { %v190_v23 = vpop.permute.xlu2 %189 }
  0x87   :  { %v210_v8 = vpop.permute.xlu1 %209 }
  0x88   :  { %v215_v7 = vpop.permute.xlu0 %214 }
  0x8f   :  { %v195_v22 = vpop.permute.xlu1 %194 }
  0x90   :  { %v200_v19 = vpop.permute.xlu0 %199 }
  0xbe   :  { %v155_v33 = vpop.f32.mrf.mxu0 }
  0xbf   :  { %v156_v48 = vadd.f32 %v155_v33, %v60_v46  ;;  %v304_v33 = vld [vmem:[%s725_s5 + $0x18] sm:$0xff] }
  0xc1   :  { %v167_v51 = vmax.f32 %v156_v48, 0.0 }
  0xc6   :  { %v158_v34 = vpop.f32.mrf.mxu0 }
  0xc7   :  { %v159_v44 = vadd.f32 %v158_v34, %v65_v38  ;;  %v322_v38 = vpop.permute.xlu1 %321 }
  0xc9   :  { %v168_v50 = vmax.f32 %v159_v44, 0.0 }
  0xce   :  { %v161_v37 = vpop.f32.mrf.mxu0 }
  0xcf   :  { %v162_v42 = vadd.f32 %v161_v37, %v70_v40  ;;  %v327_v37 = vpop.permute.xlu0 %326 }
  0xd1   :  { %v169_v49 = vmax.f32 %v162_v42, 0.0  ;;  %v317_v42 = vpop.permute.xlu2 %316 }
  0xd6   :  { %v164_v41 = vpop.f32.mrf.mxu0 }
  0xd7   :  { %v165_v43 = vadd.f32 %v164_v41, %v75_v36 }
  0xd9   :  { %v170_v45 = vmax.f32 %v165_v43, 0.0 }
  0xdb   :  { %264 = vmatpush.msra.mxu1 %v170_v45  ;;  %v312_v45 = vpop.permute.xlu0 %311 }
  0xdd   :  { %265 = vmatpush.msra.mxu1 %v169_v49 }
  0xdf   :  { %266 = vmatpush.msra.mxu1 %v168_v50  ;;  %v375_v50 = vld [vmem:[%s727_s7] sm:$0x3] }
  0xe1   :  { %267 = vmatpush.msra.mxu1 %v167_v51  ;;  %v380_v51 = vpop.permute.xlu1 %379 }
  0xe2   :  { %442 = vmatmul.msk.f32.vlgmr.msra.gmra.mxu1 %vm227_vm1, %v171_v52 }
  0xea   :  { %443 = vmatmul.msk.f32.gmra.mxu1 %vm227_vm1, %v172_v54 }
  0xf2   :  { %444 = vmatmul.msk.f32.gmra.mxu1 %vm227_vm1, %v173_v55 }
  0xfa   :  { %445 = vmatmul.msk.f32.gmra.mxu1 %vm227_vm1, %v174_v56 }
 0x102   :  { %446 = vmatmul.msk.f32.gmra.mxu1 %vm227_vm1, %v175_v58 }
 0x10a   :  { %447 = vmatmul.msk.f32.gmra.mxu1 %vm227_vm1, %v176_v59 }
 0x112   :  { %448 = vmatmul.msk.f32.gmra.mxu1 %vm227_vm1, %v177_v60 }
 0x11a   :  { %449 = vmatmul.msk.f32.gmra.mxu1 %vm227_vm1, %v178_v61 }
 0x15f   :  { %v269_v62 = vpop.f32.mrf.mxu1 }
 0x160   :  { %v270_v26 = vadd.f32 %v269_v62, %v190_v23 }
 0x162   :  { %v293_v29 = vmax.f32 %v270_v26, 0.0 }
 0x167   :  { %v272_v63 = vpop.f32.mrf.mxu1 }
 0x168   :  { %v273_v24 = vadd.f32 %v272_v63, %v195_v22 }
 0x16a   :  { %v294_v28 = vmax.f32 %v273_v24, 0.0 }
 0x16f   :  { %v275_v0 = vpop.f32.mrf.mxu1 }
 0x170   :  { %v276_v20 = vadd.f32 %v275_v0, %v200_v19 }
 0x172   :  { %v295_v27 = vmax.f32 %v276_v20, 0.0 }
 0x177   :  { %v278_v1 = vpop.f32.mrf.mxu1 }
 0x178   :  { %v279_v17 = vadd.f32 %v278_v1, %v205_v9 }
 0x17a   :  { %v296_v25 = vmax.f32 %v279_v17, 0.0 }
 0x17f   :  { %v281_v2 = vpop.f32.mrf.mxu1 }
 0x180   :  { %v282_v15 = vadd.f32 %v281_v2, %v210_v8 }
 0x182   :  { %v297_v21 = vmax.f32 %v282_v15, 0.0 }
 0x187   :  { %v284_v4 = vpop.f32.mrf.mxu1 }
 0x188   :  { %v285_v13 = vadd.f32 %v284_v4, %v215_v7 }
 0x18a   :  { %v298_v18 = vmax.f32 %v285_v13, 0.0 }
 0x18f   :  { %v287_v6 = vpop.f32.mrf.mxu1 }
 0x190   :  { %v288_v11 = vadd.f32 %v287_v6, %v220_v5 }
 0x192   :  { %v299_v16 = vmax.f32 %v288_v11, 0.0 }
 0x197   :  { %v290_v10 = vpop.f32.mrf.mxu1 }
 0x198   :  { %v291_v12 = vadd.f32 %v290_v10, %v225_v3 }
 0x19a   :  { %v300_v14 = vmax.f32 %v291_v12, 0.0 }
 0x19c   :  { %350 = vmatpush.msra.mxu2 %v300_v14 }
 0x19e   :  { %351 = vmatpush.msra.mxu2 %v299_v16 }
 0x1a0   :  { %352 = vmatpush.msra.mxu2 %v298_v18 }
 0x1a2   :  { %353 = vmatpush.msra.mxu2 %v297_v21 }
 0x1a4   :  { %354 = vmatpush.msra.mxu2 %v296_v25 }
 0x1a6   :  { %355 = vmatpush.msra.mxu2 %v295_v27 }
 0x1a8   :  { %356 = vmatpush.msra.mxu2 %v294_v28 }
 0x1aa   :  { %357 = vmatpush.msra.mxu2 %v293_v29 }
 0x1ab   :  { %450 = vmatmul.msk.f32.vlgmr.msra.gmra.mxu2 %vm329_vm2, %v301_v30 }
 0x1b3   :  { %451 = vmatmul.msk.f32.gmra.mxu2 %vm329_vm2, %v302_v31 }
 0x1bb   :  { %452 = vmatmul.msk.f32.gmra.mxu2 %vm329_vm2, %v303_v32 }
 0x1c3   :  { %453 = vmatmul.msk.f32.gmra.mxu2 %vm329_vm2, %v304_v33 }
 0x22e   :  { %v359_v34 = vpop.f32.mrf.mxu2 }
 0x22f   :  { %v360_v46 = vadd.f32 %v359_v34, %v312_v45 }
 0x231   :  { %v371_v49 = vmax.f32 %v360_v46, 0.0 }
 0x236   :  { %v362_v35 = vpop.f32.mrf.mxu2 }
 0x237   :  { %v363_v43 = vadd.f32 %v362_v35, %v317_v42 }
 0x239   :  { %v372_v48 = vmax.f32 %v363_v43, 0.0 }
 0x23e   :  { %v365_v36 = vpop.f32.mrf.mxu2 }
 0x23f   :  { %v366_v40 = vadd.f32 %v365_v36, %v322_v38 }
 0x241   :  { %v373_v47 = vmax.f32 %v366_v40, 0.0 }
 0x246   :  { %v368_v39 = vpop.f32.mrf.mxu2 }
 0x247   :  { %v369_v41 = vadd.f32 %v368_v39, %v327_v37 }
 0x249   :  { %v374_v44 = vmax.f32 %v369_v41, 0.0 }
 0x24b   :  { %397 = vmatpush.msra.mxu3 %v374_v44 }
 0x24d   :  { %398 = vmatpush.msra.mxu3 %v373_v47 }
 0x24f   :  { %399 = vmatpush.msra.mxu3 %v372_v48 }
 0x251   :  { %400 = vmatpush.msra.mxu3 %v371_v49 }
 0x252   :  { %454 = vmatmul.msk.f32.vlgmr.msra.gmra.mxu3 %vm227_vm1, %v375_v50 }
 0x2d5   :  { %v402_v52 = vpop.f32.mrf.mxu3 }
 0x2d6   :  { %v403_v53 = vadd.f32 %v402_v52, %v380_v51 }
 0x2d8   :  { %405 = vst [vmem:[#allocation2] sm:$0x3] %v403_v53 }
 0x2d9   :  { %416 = dma.vmem_to_hbm [thread:$0]  %s412_s13, 32, %s414_s16, [#allocation3]  }
 0x2da   :  { %484 = dma.done.wait [#allocation3], 32  }
 0x2db   :  { %485 = vsyncadd [#allocation3], 4294967264 }
 0x2dc   :  { %421 = vsyncpa [#allocation3], 1 }

</bundles_post_ra>
